<compile_context>
chip_gen: v6e
topology: v6e:2x2x1
jax: 0.10.0
libtpu: 0.0.40
codegen_flags: <defaults>
</compile_context>

<pallas_src>
import functools

import jax
import jax.numpy as jnp
from jax import lax
from jax.experimental import pallas as pl
from jax.experimental.pallas import tpu as pltpu


def _round_up(x, m):
    return (x + m - 1) // m * m


# ----------------------------- Pallas kernel --------------------------------
def ffn_block_kernel(x_ref, gamma_ref, beta_ref, w1_ref, b1_ref, w2_ref, b2_ref,
                     o_ref, xn_ref, acc_ref, *, eps):
    # x_ref     : (tm, D)  input rows (used for LayerNorm AND the residual)
    # gamma_ref : (1, D)   LayerNorm weight
    # beta_ref  : (1, D)   LayerNorm bias
    # w1_ref    : (D, tf)  W1.T chunk (bf16)
    # b1_ref    : (1, tf)  b1 chunk (f32)
    # w2_ref    : (tf, D)  W2.T chunk (bf16)
    # b2_ref    : (1, D)   b2 (f32)
    # o_ref     : (tm, D)  output rows
    # xn_ref    : (tm, D)  VMEM scratch, cached normalized rows (bf16)
    # acc_ref   : (tm, D)  VMEM scratch, f32 accumulator over d_ff chunks
    f = pl.program_id(1)

    @pl.when(f == 0)
    def _init():
        x = x_ref[...].astype(jnp.float32)
        mu = jnp.mean(x, axis=-1, keepdims=True)
        var = jnp.mean(jnp.square(x - mu), axis=-1, keepdims=True)
        xn = (x - mu) * lax.rsqrt(var + eps)
        xn = xn * gamma_ref[...] + beta_ref[...]
        xn_ref[...] = xn.astype(xn_ref.dtype)
        acc_ref[...] = jnp.zeros_like(acc_ref)

    # h_chunk = relu(xn @ W1.T[:, chunk] + b1[chunk])   (dropout = identity, eval)
    h = jnp.dot(xn_ref[...], w1_ref[...], preferred_element_type=jnp.float32)
    h = jnp.maximum(h + b1_ref[...], 0.0)
    # accumulate h_chunk @ W2.T[chunk, :] in f32
    acc_ref[...] += jnp.dot(h.astype(w2_ref.dtype), w2_ref[...],
                            preferred_element_type=jnp.float32)

    @pl.when(f == pl.num_programs(1) - 1)
    def _finish():
        out = acc_ref[...] + b2_ref[...] + x_ref[...].astype(jnp.float32)
        o_ref[...] = out.astype(o_ref.dtype)


# ------------------------------ wrapper --------------------------------------
def feed_forward_block(x, gamma, beta, w1, b1, w2, b2, *, eps=1e-5,
                       tm=256, tf=512, compute_dtype=jnp.bfloat16):
    """FeedForwardBlock forward (eval mode).

    x    : (B, L, d_model) float
    gamma, beta : (d_model,)         LayerNorm affine params
    w1   : (d_ff, d_model), b1: (d_ff,)      -- nn.Linear(d_model, d_ff)
    w2   : (d_model, d_ff), b2: (d_model,)   -- nn.Linear(d_ff, d_model)
    returns (B, L, d_model) float32
    """
    B, L, D = x.shape
    F = w1.shape[0]
    assert w1.shape == (F, D) and w2.shape == (D, F)
    M = B * L

    # Row tile: large by default, clamped (and rows zero-padded) for small M.
    tm = min(tm, _round_up(M, 8))
    Mp = _round_up(M, tm)
    # d_ff tile: multiple of 128; pad d_ff with zero columns if needed (safe:
    # padded hidden units produce relu(0)=0 and contribute nothing).
    tf = min(tf, _round_up(F, 128))
    Fp = _round_up(F, tf)

    x2d = x.reshape(M, D).astype(jnp.float32)
    if Mp != M:
        x2d = jnp.pad(x2d, ((0, Mp - M), (0, 0)))

    w1T = jnp.transpose(w1).astype(compute_dtype)          # (D, F)
    w2T = jnp.transpose(w2).astype(compute_dtype)          # (F, D)
    b1r = b1.reshape(1, F).astype(jnp.float32)
    if Fp != F:
        w1T = jnp.pad(w1T, ((0, 0), (0, Fp - F)))
        w2T = jnp.pad(w2T, ((0, Fp - F), (0, 0)))
        b1r = jnp.pad(b1r, ((0, 0), (0, Fp - F)))
    gamma_r = gamma.reshape(1, D).astype(jnp.float32)
    beta_r = beta.reshape(1, D).astype(jnp.float32)
    b2r = b2.reshape(1, D).astype(jnp.float32)

    grid = (Mp // tm, Fp // tf)

    out2d = pl.pallas_call(
        functools.partial(ffn_block_kernel, eps=eps),
        out_shape=jax.ShapeDtypeStruct((Mp, D), jnp.float32),
        grid_spec=pltpu.PrefetchScalarGridSpec(
            num_scalar_prefetch=0,
            grid=grid,
            in_specs=[
                pl.BlockSpec((tm, D), lambda i, f: (i, 0)),   # x rows (LN + residual)
                pl.BlockSpec((1, D), lambda i, f: (0, 0)),    # LN gamma
                pl.BlockSpec((1, D), lambda i, f: (0, 0)),    # LN beta
                pl.BlockSpec((D, tf), lambda i, f: (0, f)),   # W1.T chunk
                pl.BlockSpec((1, tf), lambda i, f: (0, f)),   # b1 chunk
                pl.BlockSpec((tf, D), lambda i, f: (f, 0)),   # W2.T chunk
                pl.BlockSpec((1, D), lambda i, f: (0, 0)),    # b2
            ],
            out_specs=pl.BlockSpec((tm, D), lambda i, f: (i, 0)),
            scratch_shapes=[
                pltpu.VMEM((tm, D), compute_dtype),   # cached normalized rows
                pltpu.VMEM((tm, D), jnp.float32),     # f32 accumulator
            ],
        ),
        compiler_params=pltpu.CompilerParams(
            # rows shard across TensorCores; d_ff is a reduction (accumulator).
            dimension_semantics=("parallel", "arbitrary"),
            # Raised from the default scoped limit; kept < 64 MiB so it is
            # also valid on v7x (v5e/v6e have 128 MiB physical and could go higher).
            vmem_limit_bytes=48 * 1024 * 1024,
        ),
    )(x2d, gamma_r, beta_r, w1T, b1r, w2T, b2r)

    return out2d[:M].reshape(B, L, D)


# --------------------------------- demo ---------------------------------------
if __name__ == "__main__":
    # Small transformer-ish config (d_model multiple of 128 -> lane-dense stores).
    B, L, d_model, d_ff = 2, 8, 128, 256

    key = jax.random.PRNGKey(0)
    kx, kg, kb, k1, kb1, k2, kb2 = jax.random.split(key, 7)

    x = jax.random.normal(kx, (B, L, d_model), dtype=jnp.float32)
    gamma = 1.0 + 0.1 * jax.random.normal(kg, (d_model,), dtype=jnp.float32)
    beta = 0.1 * jax.random.normal(kb, (d_model,), dtype=jnp.float32)
    w1 = 0.02 * jax.random.normal(k1, (d_ff, d_model), dtype=jnp.float32)
    b1 = 0.02 * jax.random.normal(kb1, (d_ff,), dtype=jnp.float32)
    w2 = 0.02 * jax.random.normal(k2, (d_model, d_ff), dtype=jnp.float32)
    b2 = 0.02 * jax.random.normal(kb2, (d_model,), dtype=jnp.float32)

    out = feed_forward_block(x, gamma, beta, w1, b1, w2, b2)
    out = jax.block_until_ready(out)

    # Pure-JAX f32 reference (module semantics, dropout = identity in eval mode).
    eps = 1e-5
    mu = x.mean(-1, keepdims=True)
    var = jnp.mean(jnp.square(x - mu), -1, keepdims=True)
    xn = (x - mu) * lax.rsqrt(var + eps) * gamma + beta
    h = jnp.maximum(jnp.einsum("bld,fd->blf", xn, w1) + b1, 0.0)
    ref = jnp.einsum("blf,df->bld", h, w2) + b2 + x

    assert out.shape == (B, L, d_model)
    # bf16 MXU inputs with f32 accumulation -> small deviation from the pure-f32 reference.
    assert jnp.allclose(out, ref, atol=1e-2, rtol=1e-2), "mismatch vs reference"

    print("KERNEL_OK")
</pallas_src>

<mosaic_0001>
module attributes {stable_mosaic.version = 11 : i64} {
  func.func @ffn_block_kernel(%arg0: i32, %arg1: i32, %arg2: memref<16x128xf32, #tpu.memory_space<vmem>>, %arg3: memref<1x128xf32, #tpu.memory_space<vmem>>, %arg4: memref<1x128xf32, #tpu.memory_space<vmem>>, %arg5: memref<128x256xbf16, #tpu.memory_space<vmem>>, %arg6: memref<1x256xf32, #tpu.memory_space<vmem>>, %arg7: memref<256x128xbf16, #tpu.memory_space<vmem>>, %arg8: memref<1x128xf32, #tpu.memory_space<vmem>>, %arg9: memref<16x128xf32, #tpu.memory_space<vmem>>, %arg10: memref<16x128xbf16, #tpu.memory_space<vmem>>, %arg11: memref<16x128xf32, #tpu.memory_space<vmem>>) attributes {dimension_semantics = [#tpu.dimension_semantics<parallel>, #tpu.dimension_semantics<arbitrary>], iteration_bounds = array<i64: 1, 1>, scalar_prefetch = 0 : i64, scratch_operands = 2 : i64, tpu.core_type = #tpu.core_type<tc>, window_params = [{transform_indices = @transform_0, window_bounds = array<i64: 16, 128>}, {pipeline_mode = #tpu.pipeline_mode<synchronous>, transform_indices = @transform_1, window_bounds = array<i64: 1, 128>}, {pipeline_mode = #tpu.pipeline_mode<synchronous>, transform_indices = @transform_2, window_bounds = array<i64: 1, 128>}, {transform_indices = @transform_3, window_bounds = array<i64: 128, 256>}, {transform_indices = @transform_4, window_bounds = array<i64: 1, 256>}, {transform_indices = @transform_5, window_bounds = array<i64: 256, 128>}, {pipeline_mode = #tpu.pipeline_mode<synchronous>, transform_indices = @transform_6, window_bounds = array<i64: 1, 128>}, {transform_indices = @transform_7, window_bounds = array<i64: 16, 128>}]} {
    %c0_i32 = arith.constant 0 : i32
    %0 = arith.cmpi eq, %arg1, %c0_i32 : i32
    %1 = arith.extui %0 : i1 to i32
    %c0_i32_0 = arith.constant 0 : i32
    %2 = arith.cmpi ne, %1, %c0_i32_0 : i32
    scf.if %2 {
      %c0_16 = arith.constant 0 : index
      %c0_17 = arith.constant 0 : index
      %20 = vector.load %arg2[%c0_16, %c0_17] : memref<16x128xf32, #tpu.memory_space<vmem>>, vector<16x128xf32>
      %cst_18 = arith.constant dense<0.000000e+00> : vector<16xf32>
      %21 = vector.multi_reduction <add>, %20, %cst_18 [1] : vector<16x128xf32> to vector<16xf32>
      %22 = vector.shape_cast %21 : vector<16xf32> to vector<16x1xf32>
      %cst_19 = arith.constant 1.280000e+02 : f32
      %23 = vector.broadcast %cst_19 : f32 to vector<16x1xf32>
      %24 = arith.divf %22, %23 : vector<16x1xf32>
      %25 = vector.broadcast %24 : vector<16x1xf32> to vector<16x128xf32>
      %26 = arith.subf %20, %25 : vector<16x128xf32>
      %27 = arith.mulf %26, %26 : vector<16x128xf32>
      %cst_20 = arith.constant dense<0.000000e+00> : vector<16xf32>
      %28 = vector.multi_reduction <add>, %27, %cst_20 [1] : vector<16x128xf32> to vector<16xf32>
      %29 = vector.shape_cast %28 : vector<16xf32> to vector<16x1xf32>
      %cst_21 = arith.constant 1.280000e+02 : f32
      %30 = vector.broadcast %cst_21 : f32 to vector<16x1xf32>
      %31 = arith.divf %29, %30 : vector<16x1xf32>
      %32 = vector.broadcast %24 : vector<16x1xf32> to vector<16x128xf32>
      %33 = arith.subf %20, %32 : vector<16x128xf32>
      %cst_22 = arith.constant 9.99999974E-6 : f32
      %34 = vector.broadcast %cst_22 : f32 to vector<16x1xf32>
      %35 = arith.addf %31, %34 : vector<16x1xf32>
      %36 = math.rsqrt %35 : vector<16x1xf32>
      %37 = vector.broadcast %36 : vector<16x1xf32> to vector<16x128xf32>
      %38 = arith.mulf %33, %37 : vector<16x128xf32>
      %c0_23 = arith.constant 0 : index
      %c0_24 = arith.constant 0 : index
      %39 = vector.load %arg3[%c0_23, %c0_24] : memref<1x128xf32, #tpu.memory_space<vmem>>, vector<1x128xf32>
      %40 = vector.broadcast %39 : vector<1x128xf32> to vector<16x128xf32>
      %41 = arith.mulf %38, %40 : vector<16x128xf32>
      %c0_25 = arith.constant 0 : index
      %c0_26 = arith.constant 0 : index
      %42 = vector.load %arg4[%c0_25, %c0_26] : memref<1x128xf32, #tpu.memory_space<vmem>>, vector<1x128xf32>
      %43 = vector.broadcast %42 : vector<1x128xf32> to vector<16x128xf32>
      %44 = arith.addf %41, %43 : vector<16x128xf32>
      %45 = arith.truncf %44 : vector<16x128xf32> to vector<16x128xbf16>
      %c0_27 = arith.constant 0 : index
      %c0_28 = arith.constant 0 : index
      %46 = vector.load %arg10[%c0_27, %c0_28] : memref<16x128xbf16, #tpu.memory_space<vmem>>, vector<16x128xbf16>
      tpu.vector_store %arg10[%c0_27, %c0_28], %45 {strides = array<i32>} : memref<16x128xbf16, #tpu.memory_space<vmem>>, vector<16x128xbf16>,
      %cst_29 = arith.constant 0.000000e+00 : f32
      %47 = vector.broadcast %cst_29 : f32 to vector<16x128xf32>
      %c0_30 = arith.constant 0 : index
      %c0_31 = arith.constant 0 : index
      %48 = vector.load %arg11[%c0_30, %c0_31] : memref<16x128xf32, #tpu.memory_space<vmem>>, vector<16x128xf32>
      tpu.vector_store %arg11[%c0_30, %c0_31], %47 {strides = array<i32>} : memref<16x128xf32, #tpu.memory_space<vmem>>, vector<16x128xf32>,
    } else {
    }
    %c0 = arith.constant 0 : index
    %c0_1 = arith.constant 0 : index
    %3 = vector.load %arg10[%c0, %c0_1] : memref<16x128xbf16, #tpu.memory_space<vmem>>, vector<16x128xbf16>
    %c0_2 = arith.constant 0 : index
    %c0_3 = arith.constant 0 : index
    %4 = vector.load %arg5[%c0_2, %c0_3] : memref<128x256xbf16, #tpu.memory_space<vmem>>, vector<128x256xbf16>
    %cst = arith.constant dense<0.000000e+00> : vector<16x256xf32>
    %5 = tpu.matmul %3, %4, %cst {dimension_numbers = #tpu.dot_dimension_numbers<[1], [0], [0], [1], [0, 0, 1, 1], [], []>} : vector<16x128xbf16>, vector<128x256xbf16>, vector<16x256xf32> -> vector<16x256xf32>
    %c0_4 = arith.constant 0 : index
    %c0_5 = arith.constant 0 : index
    %6 = vector.load %arg6[%c0_4, %c0_5] : memref<1x256xf32, #tpu.memory_space<vmem>>, vector<1x256xf32>
    %7 = vector.broadcast %6 : vector<1x256xf32> to vector<16x256xf32>
    %8 = arith.addf %5, %7 : vector<16x256xf32>
    %cst_6 = arith.constant 0.000000e+00 : f32
    %9 = vector.broadcast %cst_6 : f32 to vector<16x256xf32>
    %10 = arith.maximumf %8, %9 : vector<16x256xf32>
    %c0_7 = arith.constant 0 : index
    %c0_8 = arith.constant 0 : index
    %11 = vector.load %arg11[%c0_7, %c0_8] : memref<16x128xf32, #tpu.memory_space<vmem>>, vector<16x128xf32>
    %12 = arith.truncf %10 : vector<16x256xf32> to vector<16x256xbf16>
    %c0_9 = arith.constant 0 : index
    %c0_10 = arith.constant 0 : index
    %13 = vector.load %arg7[%c0_9, %c0_10] : memref<256x128xbf16, #tpu.memory_space<vmem>>, vector<256x128xbf16>
    %cst_11 = arith.constant dense<0.000000e+00> : vector<16x128xf32>
    %14 = tpu.matmul %12, %13, %cst_11 {dimension_numbers = #tpu.dot_dimension_numbers<[1], [0], [0], [1], [0, 0, 1, 1], [], []>} : vector<16x256xbf16>, vector<256x128xbf16>, vector<16x128xf32> -> vector<16x128xf32>
    %15 = arith.addf %11, %14 : vector<16x128xf32>
    %c0_12 = arith.constant 0 : index
    %c0_13 = arith.constant 0 : index
    %16 = vector.load %arg11[%c0_12, %c0_13] : memref<16x128xf32, #tpu.memory_space<vmem>>, vector<16x128xf32>
    tpu.vector_store %arg11[%c0_12, %c0_13], %15 {strides = array<i32>} : memref<16x128xf32, #tpu.memory_space<vmem>>, vector<16x128xf32>,
    %c0_i32_14 = arith.constant 0 : i32
    %17 = arith.cmpi eq, %arg1, %c0_i32_14 : i32
    %18 = arith.extui %17 : i1 to i32
    %c0_i32_15 = arith.constant 0 : i32
    %19 = arith.cmpi ne, %18, %c0_i32_15 : i32
    scf.if %19 {
      %c0_16 = arith.constant 0 : index
      %c0_17 = arith.constant 0 : index
      %20 = vector.load %arg11[%c0_16, %c0_17] : memref<16x128xf32, #tpu.memory_space<vmem>>, vector<16x128xf32>
      %c0_18 = arith.constant 0 : index
      %c0_19 = arith.constant 0 : index
      %21 = vector.load %arg8[%c0_18, %c0_19] : memref<1x128xf32, #tpu.memory_space<vmem>>, vector<1x128xf32>
      %22 = vector.broadcast %21 : vector<1x128xf32> to vector<16x128xf32>
      %23 = arith.addf %20, %22 : vector<16x128xf32>
      %c0_20 = arith.constant 0 : index
      %c0_21 = arith.constant 0 : index
      %24 = vector.load %arg2[%c0_20, %c0_21] : memref<16x128xf32, #tpu.memory_space<vmem>>, vector<16x128xf32>
      %25 = arith.addf %23, %24 : vector<16x128xf32>
      %c0_22 = arith.constant 0 : index
      %c0_23 = arith.constant 0 : index
      %26 = vector.load %arg9[%c0_22, %c0_23] : memref<16x128xf32, #tpu.memory_space<vmem>>, vector<16x128xf32>
      tpu.vector_store %arg9[%c0_22, %c0_23], %25 {strides = array<i32>} : memref<16x128xf32, #tpu.memory_space<vmem>>, vector<16x128xf32>,
    } else {
    }
    return
  }
  func.func @transform_0(%arg0: i32, %arg1: i32) -> (i32, i32) {
    %c0_i32 = arith.constant 0 : i32
    %c0_i32_0 = arith.constant 0 : i32
    return %arg0, %c0_i32 : i32, i32
  }
  func.func @transform_1(%arg0: i32, %arg1: i32) -> (i32, i32) {
    %c0_i32 = arith.constant 0 : i32
    %c0_i32_0 = arith.constant 0 : i32
    %c0_i32_1 = arith.constant 0 : i32
    return %c0_i32, %c0_i32_0 : i32, i32
  }
  func.func @transform_2(%arg0: i32, %arg1: i32) -> (i32, i32) {
    %c0_i32 = arith.constant 0 : i32
    %c0_i32_0 = arith.constant 0 : i32
    %c0_i32_1 = arith.constant 0 : i32
    return %c0_i32, %c0_i32_0 : i32, i32
  }
  func.func @transform_3(%arg0: i32, %arg1: i32) -> (i32, i32) {
    %c0_i32 = arith.constant 0 : i32
    %c0_i32_0 = arith.constant 0 : i32
    return %c0_i32, %arg1 : i32, i32
  }
  func.func @transform_4(%arg0: i32, %arg1: i32) -> (i32, i32) {
    %c0_i32 = arith.constant 0 : i32
    %c0_i32_0 = arith.constant 0 : i32
    return %c0_i32, %arg1 : i32, i32
  }
  func.func @transform_5(%arg0: i32, %arg1: i32) -> (i32, i32) {
    %c0_i32 = arith.constant 0 : i32
    %c0_i32_0 = arith.constant 0 : i32
    return %arg1, %c0_i32 : i32, i32
  }
  func.func @transform_6(%arg0: i32, %arg1: i32) -> (i32, i32) {
    %c0_i32 = arith.constant 0 : i32
    %c0_i32_0 = arith.constant 0 : i32
    %c0_i32_1 = arith.constant 0 : i32
    return %c0_i32, %c0_i32_0 : i32, i32
  }
  func.func @transform_7(%arg0: i32, %arg1: i32) -> (i32, i32) {
    %c0_i32 = arith.constant 0 : i32
    %c0_i32_0 = arith.constant 0 : i32
    return %arg0, %c0_i32 : i32, i32
  }
}

</mosaic_0001>

<bundles_post_ra>
// kernel: tpu_custom_call.1
= control target key start
LH: loop header
LB: loop body
LE: loop exit
PB: predicated region body
PF: predicated region fallthrough
CT: control target
= control target key end

     0   :  { %12 = vsyncpa [#allocation5], 0  ;;  %s852_s0 = inlined_call_operand.hbm [shape: f32[16,128], index: 0, kind: input, shape index: {}]   ;;  %s853_s1 = inlined_call_operand.vmem [shape: f32[1,128], index: 1, kind: input, shape index: {}]   ;;  %s854_s2 = inlined_call_operand.hbm [shape: f32[1,128], index: 2, kind: input, shape index: {}]   ;;  %s855_s3 = inlined_call_operand.hbm [shape: bf16[128,256], index: 3, kind: input, shape index: {}]   ;;  %s856_s4 = inlined_call_operand.vmem [shape: f32[1,256], index: 4, kind: input, shape index: {}]   ;;  %s857_s5 = inlined_call_operand.hbm [shape: bf16[256,128], index: 5, kind: input, shape index: {}]   ;;  %s858_s6 = inlined_call_operand.vmem [shape: f32[1,128], index: 6, kind: input, shape index: {}]   ;;  %s859_s7 = inlined_call_operand.hbm [shape: f32[16,128], index: 7, kind: output, shape index: {}]  }
   0x1   :  { %13 = vsyncpa [#allocation8], 0 }
   0x2   :  { %14 = vsyncpa [#allocation11], 0 }
   0x3   :  { %15 = vsyncpa [#allocation6], 0  ;;  %s749_s24 = smov [#allocation7]   ;;  %s750_s26 = smov [#allocation4]  }
   0x4   :  { %s36_s25 = sshll.u32 %s749_s24, 4  ;;  %s21_s27 = sshll.u32 %s750_s26, 4  ;;  %s37_s25 = int_to_ptr.vmem [resolvable:$true] %s36_s25  ;;  %s22_s27 = int_to_ptr.vmem [resolvable:$true] %s21_s27 }
   0x5   :  { %s649_s28 = scalar_lea.vmem %s37_s25, 16  ;;  %s653_s29 = scalar_lea.vmem %s37_s25, 32 }
   0x6   :  { %p650_p0 = scmp.ne.s32.totalorder %s37_s25, %s649_s28  ;;  %p654_p1 = scmp.lt.s32.totalorder %s37_s25, %s37_s25 }
   0x7   :  { %p655_p2 = scmp.lt.s32.totalorder %s653_s29, %s649_s28 }
   0x9   :  { %p656_p3 = por %p655_p2, %p654_p1 }
   0xb   :  { %p657_p4 = pnand %p656_p3, %p650_p0 }
   0xd   :  { %660 = shalt.err (!%p657_p4)
}
   0xe   :  { %39 = dma.hbm_to_vmem [thread:$0]  %s854_s2, 16, %s37_s25, [#allocation8]  }
   0xf   :  { %s669_s9 = scalar_lea.vmem %s22_s27, 256  ;;  %p674_p6 = scmp.lt.s32.totalorder %s22_s27, %s22_s27 }
  0x10   :  { %p670_p5 = scmp.ne.s32.totalorder %s22_s27, %s669_s9  ;;  %p675_p7 = scmp.lt.s32.totalorder %s669_s9, %s669_s9 }
  0x12   :  { %p676_p8 = por %p675_p7, %p674_p6 }
  0x14   :  { %p677_p9 = pnand %p676_p8, %p670_p5 }
  0x16   :  { %680 = shalt.err (!%p677_p9)
}
  0x17   :  { %s751_s10 = smov 128   ;;  %s752_s11 = smov 8  }
  0x18   :  { %27 = dma.hbm_to_vmem [thread:$0]  %s852_s0, 256, %s22_s27, [#allocation5], %s751_s10, %s751_s10, %s752_s11  }
  0x19   :  { %s753_s14 = smov [#allocation9]   ;;  %s754_s16 = smov [#allocation10]  }
  0x1a   :  { %s45_s15 = sshll.u32 %s753_s14, 4  ;;  %s59_s2 = sshll.u32 %s754_s16, 4  ;;  %s46_s15 = int_to_ptr.vmem [resolvable:$true] %s45_s15  ;;  %s60_s2 = int_to_ptr.vmem [resolvable:$true] %s59_s2 }
  0x1b   :  { %s689_s17 = scalar_lea.vmem %s46_s15, 2048  ;;  %p694_p11 = scmp.lt.s32.totalorder %s46_s15, %s46_s15 }
  0x1c   :  { %p690_p10 = scmp.ne.s32.totalorder %s46_s15, %s689_s17  ;;  %p695_p12 = scmp.lt.s32.totalorder %s689_s17, %s689_s17 }
  0x1e   :  { %p696_p13 = por %p695_p12, %p694_p11 }
  0x20   :  { %p697_p0 = pnand %p696_p13, %p690_p10 }
  0x22   :  { %700 = shalt.err (!%p697_p0)
}
  0x23   :  { %51 = dma.hbm_to_vmem [thread:$0]  %s855_s3, 2048, %s46_s15, [#allocation8], %s751_s10, %s751_s10, %s752_s11  }
  0x24   :  { %s709_s0 = scalar_lea.vmem %s60_s2, 2048  ;;  %p714_p2 = scmp.lt.s32.totalorder %s60_s2, %s60_s2 }
  0x25   :  { %p710_p1 = scmp.ne.s32.totalorder %s60_s2, %s709_s0  ;;  %p715_p3 = scmp.lt.s32.totalorder %s709_s0, %s709_s0 }
  0x27   :  { %p716_p4 = por %p715_p3, %p714_p2 }
  0x29   :  { %p717_p5 = pnand %p716_p4, %p710_p1 }
  0x2b   :  { %720 = shalt.err (!%p717_p5)
}
  0x2c   :  { %s755_s20 = smov 64   ;;  %s756_s21 = smov 4  }
  0x2d   :  { %65 = dma.hbm_to_vmem [thread:$0]  %s857_s5, 2048, %s60_s2, [#allocation11], %s755_s20, %s755_s20, %s756_s21  }
  0x2e   :  { %741 = dma.done.wait [#allocation5], 256  }
  0x2f   :  { %742 = vsyncadd [#allocation5], 4294967040 }
  0x30   :  { %743 = dma.done.wait [#allocation8], 2064  }
  0x31   :  { %744 = vsyncadd [#allocation8], 4294965232 }
  0x32   :  { %745 = dma.done.wait [#allocation11], 2048  }
  0x33   :  { %746 = vsyncadd [#allocation11], 4294965248  ;;  %v817_v0 = vld [vmem:[#allocation4] sm:$0xff]  ;;  %v819_v1 = vld [vmem:[#allocation4 + $0x8] sm:$0xff]  ;;  %v757_v26 = vmov 0   ;;  %v160_v61 = vlaneseq  ;;  %s758_s26 = smov [#allocation12]  }
  0x34   :  { %87 = vadd.xlane.f32.xlu0 %v817_v0  ;;  %v596_v10 = vld [vmem:[#allocation9 + $0x74] ss:$8 sps:$4 sm:$0xff]   ;;  %v598_v11 = vld [vmem:[#allocation9 + $0x70] ss:$8 sps:$4 sm:$0xff]   ;;  %v599_v12 = vld [vmem:[#allocation9 + $0x64] ss:$8 sps:$4 sm:$0xff]   ;;  %288 = vmatprep.mubr.bf16.mxu0 %v757_v26 }
  0x35   :  { %256 = vmatprep.subr.bf16.mxu0 %v596_v10  ;;  %v601_v13 = vld [vmem:[#allocation9 + $0x60] ss:$8 sps:$4 sm:$0xff]   ;;  %v602_v14 = vld [vmem:[#allocation9 + $0x54] ss:$8 sps:$4 sm:$0xff]   ;;  %v604_v15 = vld [vmem:[#allocation9 + $0x50] ss:$8 sps:$4 sm:$0xff]  }
  0x36   :  { %257 = vmatpush1.bf16.msra.mxu0 %v598_v11  ;;  %v605_v16 = vld [vmem:[#allocation9 + $0x44] ss:$8 sps:$4 sm:$0xff]   ;;  %v607_v17 = vld [vmem:[#allocation9 + $0x40] ss:$8 sps:$4 sm:$0xff]   ;;  %v608_v18 = vld [vmem:[#allocation9 + $0x34] ss:$8 sps:$4 sm:$0xff]  }
  0x37   :  { %258 = vmatprep.subr.bf16.mxu0 %v599_v12  ;;  %v610_v19 = vld [vmem:[#allocation9 + $0x30] ss:$8 sps:$4 sm:$0xff]   ;;  %v611_v20 = vld [vmem:[#allocation9 + $0x24] ss:$8 sps:$4 sm:$0xff]   ;;  %v613_v21 = vld [vmem:[#allocation9 + $0x20] ss:$8 sps:$4 sm:$0xff]  }
  0x38   :  { %89 = vadd.xlane.f32.xlu0 %v819_v1  ;;  %v614_v22 = vld [vmem:[#allocation9 + $0x14] ss:$8 sps:$4 sm:$0xff]   ;;  %v616_v23 = vld [vmem:[#allocation9 + $0x10] ss:$8 sps:$4 sm:$0xff]   ;;  %v617_v24 = vld [vmem:[#allocation9 + $0x4] ss:$8 sps:$4 sm:$0xff]  }
  0x39   :  { %v619_v25 = vld [vmem:[#allocation9] ss:$8 sps:$4 sm:$0xff]   ;;  %v621_v27 = vld [vmem:[#allocation10 + $0x78] sm:$0xff]   ;;  %v623_v29 = vld [vmem:[#allocation10 + $0x70] sm:$0xff]   ;;  %v161_v62 = vshrl.u32 %v160_v61, 7  ;;  %s505_s27 = sshll.u32 %s758_s26, 4  ;;  %s506_s27 = int_to_ptr.vmem [resolvable:$true] %s505_s27 }
  0x3a   :  { %259 = vmatpush1.bf16.msra.mxu0 %v601_v13  ;;  %v622_v28 = vld [vmem:[#allocation10 + $0x38] sm:$0xff]   ;;  %564 = vmatprep.subr.bf16.mxu1 %v621_v27  ;;  %v624_v30 = vld [vmem:[#allocation10 + $0x30] sm:$0xff]   ;;  %v625_v31 = vld [vmem:[#allocation10 + $0x68] sm:$0xff]   ;;  %s721_s28 = scalar_lea.vmem %s506_s27, 256  ;;  %p726_p7 = scmp.lt.s32.totalorder %s506_s27, %s506_s27 }
  0x3b   :  { %260 = vmatprep.subr.bf16.mxu0 %v602_v14  ;;  %565 = vmatpush3.bf16.msra.mxu1 %v622_v28  ;;  %v626_v32 = vld [vmem:[#allocation10 + $0x28] sm:$0xff]   ;;  %v627_v33 = vld [vmem:[#allocation10 + $0x60] sm:$0xff]   ;;  %v629_v35 = vld [vmem:[#allocation10 + $0x58] sm:$0xff]   ;;  %v166_v63 = vsub.s32 1, %v161_v62  ;;  %p722_p6 = scmp.ne.s32.totalorder %s506_s27, %s721_s28  ;;  %p727_p8 = scmp.lt.s32.totalorder %s721_s28, %s721_s28 }
  0x3c   :  { %566 = vmatprep.subr.bf16.mxu1 %v623_v29  ;;  %v628_v34 = vld [vmem:[#allocation10 + $0x20] sm:$0xff]   ;;  %v630_v36 = vld [vmem:[#allocation10 + $0x18] sm:$0xff]   ;;  %v631_v55 = vld [vmem:[#allocation10 + $0x50] sm:$0xff]  }
  0x3d   :  { %v519_v45 = vld [vmem:[%s853_s1] ss:$0 sm:$0xff]  ;;  %v520_v49 = vld [vmem:[#allocation7] ss:$0 sm:$0xff]  ;;  %v632_v56 = vld [vmem:[#allocation10 + $0x10] sm:$0xff]   ;;  %p728_p9 = por %p727_p8, %p726_p7 }
  0x3e   :  { %261 = vmatpush1.bf16.msra.mxu0 %v604_v15  ;;  %v633_v57 = vld [vmem:[#allocation10 + $0x48] sm:$0xff]   ;;  %v635_v59 = vld [vmem:[#allocation10 + $0x40] sm:$0xff]  }
  0x3f   :  { %262 = vmatprep.subr.bf16.mxu0 %v605_v16  ;;  %567 = vmatpush3.bf16.msra.mxu1 %v624_v30  ;;  %v634_v58 = vld [vmem:[#allocation10 + $0x8] sm:$0xff]   ;;  %v636_v60 = vld [vmem:[#allocation10] sm:$0xff]   ;;  %p729_p10 = pnand %p728_p9, %p722_p6 }
  0x40   :  { %568 = vmatprep.subr.bf16.mxu1 %v625_v31 }
  0x42   :  { %263 = vmatpush1.bf16.msra.mxu0 %v607_v17 }
  0x43   :  { %264 = vmatprep.subr.bf16.mxu0 %v608_v18  ;;  %569 = vmatpush3.bf16.msra.mxu1 %v626_v32 }
  0x44   :  { %570 = vmatprep.subr.bf16.mxu1 %v627_v33 }
  0x46   :  { %265 = vmatpush1.bf16.msra.mxu0 %v610_v19 }
  0x47   :  { %266 = vmatprep.subr.bf16.mxu0 %v611_v20  ;;  %571 = vmatpush3.bf16.msra.mxu1 %v628_v34 }
  0x48   :  { %572 = vmatprep.subr.bf16.mxu1 %v629_v35 }
  0x4a   :  { %267 = vmatpush1.bf16.msra.mxu0 %v613_v21 }
  0x4b   :  { %268 = vmatprep.subr.bf16.mxu0 %v614_v22  ;;  %573 = vmatpush3.bf16.msra.mxu1 %v630_v36  ;;  %v556_v22 = vld [vmem:[%s858_s6] ss:$0 sm:$0xff] }
  0x4c   :  { %574 = vmatprep.subr.bf16.mxu1 %v631_v55 }
  0x4e   :  { %269 = vmatpush1.bf16.msra.mxu0 %v616_v23 }
  0x4f   :  { %270 = vmatprep.subr.bf16.mxu0 %v617_v24  ;;  %575 = vmatpush3.bf16.msra.mxu1 %v632_v56 }
  0x50   :  { %576 = vmatprep.subr.bf16.mxu1 %v633_v57 }
  0x52   :  { %271 = vmatpush1.bf16.msra.mxu0 %v619_v25 }
  0x53   :  { %577 = vmatpush3.bf16.msra.mxu1 %v634_v58 }
  0x54   :  { %578 = vmatprep.subr.bf16.mxu1 %v635_v59 }
  0x57   :  { %579 = vmatpush3.bf16.msra.mxu1 %v636_v60 }
  0xbd   :  { %v88_v2 = vpop.xlane.xlu0 %87 }
  0xbe   :  { %v92_v3 = vmul.f32 0.0078125, %v88_v2  ;;  %v162_v2 = vsub.s32 0, %v161_v62 }
  0xc0   :  { %v824_v4 = vsub.f32 %v817_v0, %v92_v3  ;;  %v158_v3 = vld [vmem:[%s856_s4] sm:$0x3] }
  0xc1   :  { %v90_v5 = vpop.xlane.xlu0 %89 }
  0xc2   :  { %v93_v6 = vmul.f32 0.0078125, %v90_v5  ;;  %v96_v7 = vmul.f32 %v824_v4, %v824_v4  ;;  %v167_v5 = vrot.slane %v158_v3, %v166_v63 }
  0xc4   :  { %v829_v8 = vsub.f32 %v819_v1, %v93_v6  ;;  %98 = vadd.xlane.f32.xlu1 %v96_v7  ;;  %v163_v6 = vrot.slane %v158_v3, %v162_v2 }
  0xc6   :  { %v97_v9 = vmul.f32 %v829_v8, %v829_v8 }
  0xc8   :  { %100 = vadd.xlane.f32.xlu1 %v97_v9 }
 0x14d   :  { %v99_v37 = vpop.xlane.xlu1 %98 }
 0x14e   :  { %v102_v38 = vmul.f32 0.0078125, %v99_v37 }
 0x150   :  { %v104_v39 = vadd.f32 1e-05, %v102_v38 }
 0x151   :  { %v101_v40 = vpop.xlane.xlu1 %100 }
 0x152   :  { %637 = vrsqrt.f32 %v104_v39  ;;  %v103_v41 = vmul.f32 0.0078125, %v101_v40 }
 0x154   :  { %v105_v42 = vadd.f32 1e-05, %v103_v41 }
 0x156   :  { %639 = vrsqrt.f32 %v105_v42 }
 0x15f   :  { %v638_v43 = vpop.eup %637 }
 0x160   :  { %v108_v44 = vmul.f32 %v638_v43, %v824_v4 }
 0x162   :  { %v117_v47 = vmul.f32 %v519_v45, %v108_v44 }
 0x163   :  { %v640_v46 = vpop.eup %639 }
 0x164   :  { %v109_v48 = vmul.f32 %v640_v46, %v829_v8  ;;  %v126_v51 = vadd.f32 %v520_v49, %v117_v47 }
 0x166   :  { %v118_v50 = vmul.f32 %v519_v45, %v109_v48 }
 0x168   :  { %v127_v52 = vadd.f32 %v520_v49, %v118_v50 }
 0x16a   :  { %v562_v53 = vpack.c.bf16 %v127_v52, %v126_v51 }
 0x16c   :  { %563 = vst [vmem:[#allocation2] sm:$0xff] %v562_v53  }
 0x173   :  { %v620_v54 = vld [vmem:[#allocation2] sm:$0xff]  }
 0x174   :  { %289 = vmatmul.mubr.bf16.vlgmr.msra.gmra.mxu0 %v620_v54 }
 0x234   :  { %v290_v4 = vpop.f32.mrf.mxu0 }
 0x235   :  { %v291_v11 = vadd.f32 %v290_v4, %v163_v6 }
 0x236   :  { %v292_v7 = vpop.f32.mrf.mxu0 }
 0x237   :  { %v293_v9 = vadd.f32 %v292_v7, %v167_v5  ;;  %v299_v17 = vmax.f32 %v291_v11, 0.0 }
 0x238   :  { %v294_v8 = vpop.f32.mrf.mxu0 }
 0x239   :  { %v295_v10 = vadd.f32 %v294_v8, %v163_v6  ;;  %v300_v15 = vmax.f32 %v293_v9, 0.0 }
 0x23a   :  { %v296_v12 = vpop.f32.mrf.mxu0 }
 0x23b   :  { %v297_v13 = vadd.f32 %v296_v12, %v167_v5  ;;  %v301_v14 = vmax.f32 %v295_v10, 0.0 }
 0x23d   :  { %v302_v16 = vmax.f32 %v297_v13, 0.0  ;;  %v305_v19 = vpack.c.bf16 %v301_v14, %v299_v17 }
 0x23f   :  { %v306_v18 = vpack.c.bf16 %v302_v16, %v300_v15 }
 0x241   :  { %467 = vmatprep.mubr.bf16.mxu1 %v306_v18 }
 0x242   :  { %468 = vmatmul.mubr.bf16.vlgmr.msra.gmra.mxu1 %v305_v19 }
 0x302   :  { %v580_v20 = vpop.f32.mrf.mxu1 }
 0x304   :  { %v581_v21 = vpop.f32.mrf.mxu1 }
 0x305   :  { %v582_v23 = vadd.f32 %v581_v21, %v580_v20 }
 0x306   :  { %v583_v24 = vpop.f32.mrf.mxu1 }
 0x307   :  { %v492_v25 = vadd.f32 %v582_v23, %v556_v22 }
 0x308   :  { %v584_v26 = vpop.f32.mrf.mxu1 }
 0x309   :  { %v496_v27 = vadd.f32 %v492_v25, %v817_v0  ;;  %v585_v28 = vadd.f32 %v584_v26, %v583_v24 }
 0x30b   :  { %498 = vst [vmem:[#allocation12] sm:$0xff] %v496_v27  ;;  %v493_v29 = vadd.f32 %v585_v28, %v556_v22 }
 0x30d   :  { %v497_v30 = vadd.f32 %v493_v29, %v819_v1 }
 0x30f   :  { %499 = vst [vmem:[#allocation12 + $0x8] sm:$0xff] %v497_v30 }
 0x310   :  { %732 = shalt.err (!%p729_p10)
}
 0x311   :  { %511 = dma.vmem_to_hbm [thread:$0]  %s506_s27, 256, %s859_s7, [#allocation6], %s751_s10, %s751_s10, %s752_s11  }
 0x312   :  { %747 = dma.done.wait [#allocation6], 256  }
 0x313   :  { %748 = vsyncadd [#allocation6], 4294967040 }
 0x314   :  { %515 = vsyncpa [#allocation5], 1 }
 0x315   :  { %516 = vsyncpa [#allocation8], 1 }
 0x316   :  { %517 = vsyncpa [#allocation11], 1 }
 0x317   :  { %518 = vsyncpa [#allocation6], 1 }

</bundles_post_ra>
